<compile_context>
chip_gen: v6e
topology: v6e:2x2x1
jax: 0.10.0
libtpu: 0.0.40
codegen_flags: <defaults>
</compile_context>

<pallas_src>
import functools

import jax
import jax.numpy as jnp
from jax.experimental import pallas as pl
from jax.experimental.pallas import tpu as pltpu


def decoder_kernel(emb_ref, ctx_ref, h_ref,
                   wxe_ref, wxc_ref, whh_ref, b_ref,
                   wfce_ref, wfch_ref, wfcc_ref, bfc_ref,
                   pred_ref, hnew_ref,
                   h_scr):
    def mm(a, b):
        return jnp.dot(a, b, preferred_element_type=jnp.float32)

    emb = emb_ref[...]          # [B, E]  bf16
    ctx = ctx_ref[...]          # [B, H]  bf16

    # ---- single-step GRU, computed once (first vocab tile), kept resident ----
    @pl.when(pl.program_id(0) == 0)
    def _gru():
        h = h_ref[...]          # [B, H] bf16
        # PyTorch gate order: r, z, n.  x = [emb ; ctx] -> split matmuls, no concat.
        r = jax.nn.sigmoid(mm(emb, wxe_ref[0]) + mm(ctx, wxc_ref[0])
                           + mm(h, whh_ref[0]) + b_ref[0])
        z = jax.nn.sigmoid(mm(emb, wxe_ref[1]) + mm(ctx, wxc_ref[1])
                           + mm(h, whh_ref[1]) + b_ref[1])
        # b_hn stays inside the r*(...) term, matching torch.nn.GRU.
        n = jnp.tanh(mm(emb, wxe_ref[2]) + mm(ctx, wxc_ref[2]) + b_ref[2]
                     + r * (mm(h, whh_ref[2]) + b_ref[3]))
        h_new = (1.0 - z) * n + z * h.astype(jnp.float32)   # [B, H] f32
        hnew_ref[...] = h_new                                # resident output block
        h_scr[...] = h_new.astype(h_scr.dtype)               # bf16 copy for the fc stage

    # ---- classifier tile: pred = [emb, h_new, ctx] @ W_fc + b (split matmuls) ----
    acc = mm(emb, wfce_ref[...])
    acc = acc + mm(h_scr[...], wfch_ref[...])
    acc = acc + mm(ctx, wfcc_ref[...])
    pred_ref[...] = acc + bfc_ref[...]                       # [B, TV] f32, lane-dense


def _round_up(x, m):
    return (x + m - 1) // m * m


def prepare_params(params, *, tile_v=512, compute_dtype=jnp.bfloat16):
    """Re-pack PyTorch-layout params into kernel-ready slabs (done once, offline)."""
    emb_tbl = params["embedding"]                 # [V, E]
    w_ih = params["w_ih"]                         # [E+H, 3H]  (transposed torch weight_ih)
    w_hh = params["w_hh"]                         # [H,   3H]
    b_ih = params["b_ih"].reshape(-1)             # [3H]
    b_hh = params["b_hh"].reshape(-1)             # [3H]
    w_fc = params["w_fc"]                         # [E+2H, V]  (transposed torch fc weight)
    b_fc = params["b_fc"].reshape(-1)             # [V]

    V, E = emb_tbl.shape
    H = w_hh.shape[0]

    # Per-gate blocks (r, z, n) so the kernel never slices along the lane dim.
    def gate_split(w):                            # [in, 3H] -> [3, in, H]
        return jnp.stack([w[:, 0:H], w[:, H:2 * H], w[:, 2 * H:3 * H]], axis=0)

    w_ih_g = gate_split(w_ih)                     # [3, E+H, H]
    wxe = w_ih_g[:, :E, :].astype(compute_dtype)  # [3, E, H]   emb -> gates
    wxc = w_ih_g[:, E:, :].astype(compute_dtype)  # [3, H, H]   ctx -> gates
    whh = gate_split(w_hh).astype(compute_dtype)  # [3, H, H]   h   -> gates

    # Fold b_ih + b_hh where legal (r, z); keep b_in / b_hn separate (n gate).
    b_gru = jnp.stack(
        [b_ih[0:H] + b_hh[0:H],
         b_ih[H:2 * H] + b_hh[H:2 * H],
         b_ih[2 * H:3 * H],
         b_hh[2 * H:3 * H]], axis=0)[:, None, :].astype(jnp.float32)   # [4, 1, H]

    # Vocab-tiled classifier: pad V so every output tile is >= 128 lanes wide.
    vp0 = _round_up(V, 128)
    TV = min(tile_v, vp0)
    Vp = _round_up(V, TV)
    pad = Vp - V
    w_fc_p = jnp.pad(w_fc, ((0, 0), (0, pad)))
    b_fc_p = jnp.pad(b_fc, ((0, pad),))
    wfc_e = w_fc_p[:E].astype(compute_dtype)          # [E, Vp]
    wfc_h = w_fc_p[E:E + H].astype(compute_dtype)     # [H, Vp]
    wfc_c = w_fc_p[E + H:].astype(compute_dtype)      # [H, Vp]
    b_fc2 = b_fc_p[None, :].astype(jnp.float32)       # [1, Vp]

    return dict(
        embedding=emb_tbl,
        wxe=wxe, wxc=wxc, whh=whh, b_gru=b_gru,
        wfc_e=wfc_e, wfc_h=wfc_h, wfc_c=wfc_c, b_fc=b_fc2,
        meta=dict(V=V, Vp=Vp, TV=TV, E=E, H=H, compute_dtype=compute_dtype),
    )


def decoder_forward(kp, input_ids, hidden, context):
    """input_ids: [B] int32; hidden, context: [1, B, H] (PyTorch GRU layout)."""
    meta = kp["meta"]
    V, Vp, TV, E, H = meta["V"], meta["Vp"], meta["TV"], meta["E"], meta["H"]
    cdt = meta["compute_dtype"]

    # TODO(synk): embedding gather could be fused into the kernel (scalar-prefetch ids
    # in SMEM + manual DMA row gather); kept as a plain XLA gather here.
    # TODO(synk): dropout is eval-mode identity (no training-mode RNG mask).
    embedded = jnp.take(kp["embedding"], input_ids, axis=0).astype(cdt)   # [B, E]
    h0 = hidden[0].astype(cdt)                                            # [B, H]
    ctx = context[0].astype(cdt)                                          # [B, H]

    B = embedded.shape[0]
    n_tiles = Vp // TV

    rep2 = lambda shape: pl.BlockSpec(shape, lambda v: (0, 0))
    rep3 = lambda shape: pl.BlockSpec(shape, lambda v: (0, 0, 0))

    grid_spec = pltpu.PrefetchScalarGridSpec(
        num_scalar_prefetch=0,
        grid=(n_tiles,),
        in_specs=[
            rep2((B, E)),                               # embedded   (resident)
            rep2((B, H)),                               # context    (resident)
            rep2((B, H)),                               # h0         (resident)
            rep3((3, E, H)),                            # wxe
            rep3((3, H, H)),                            # wxc
            rep3((3, H, H)),                            # whh
            rep3((4, 1, H)),                            # b_gru
            pl.BlockSpec((E, TV), lambda v: (0, v)),    # wfc_e  (streamed over vocab)
            pl.BlockSpec((H, TV), lambda v: (0, v)),    # wfc_h
            pl.BlockSpec((H, TV), lambda v: (0, v)),    # wfc_c
            pl.BlockSpec((1, TV), lambda v: (0, v)),    # b_fc
        ],
        out_specs=(
            pl.BlockSpec((B, TV), lambda v: (0, v)),    # prediction tile (lane-dense)
            pl.BlockSpec((B, H), lambda v: (0, 0)),     # new hidden (resident)
        ),
        scratch_shapes=[pltpu.VMEM((B, H), cdt)],       # bf16 h_new reused by every tile
    )

    pred_p, h_new = pl.pallas_call(
        decoder_kernel,
        grid_spec=grid_spec,
        out_shape=(
            jax.ShapeDtypeStruct((B, Vp), jnp.float32),
            jax.ShapeDtypeStruct((B, H), jnp.float32),
        ),
        # "arbitrary": h_new scratch / resident hidden output is shared across vocab
        # tiles, so the vocab axis must run on one core.  (For v7x 2-TC parallelism,
        # split the fc stage into its own pallas_call with a "parallel" vocab axis.)
        compiler_params=pltpu.CompilerParams(
            dimension_semantics=("arbitrary",),
            vmem_limit_bytes=32 * 1024 * 1024,
        ),
    )(embedded, ctx, h0,
      kp["wxe"], kp["wxc"], kp["whh"], kp["b_gru"],
      kp["wfc_e"], kp["wfc_h"], kp["wfc_c"], kp["b_fc"])

    return pred_p[:, :V], h_new[None, :, :]             # ([B, V], [1, B, H])


def init_params(key, output_dim, emb_dim, hid_dim):
    ks = jax.random.split(key, 7)
    scale = 0.1
    return {
        # nn.Embedding(output_dim, emb_dim)
        "embedding": scale * jax.random.normal(ks[0], (output_dim, emb_dim), jnp.float32),
        # nn.GRU(emb_dim + hid_dim, hid_dim): weight_ih [3H, E+H] stored transposed -> [E+H, 3H]
        "w_ih": scale * jax.random.normal(ks[1], (emb_dim + hid_dim, 3 * hid_dim), jnp.float32),
        "w_hh": scale * jax.random.normal(ks[2], (hid_dim, 3 * hid_dim), jnp.float32),
        "b_ih": scale * jax.random.normal(ks[3], (1, 3 * hid_dim), jnp.float32),
        "b_hh": scale * jax.random.normal(ks[4], (1, 3 * hid_dim), jnp.float32),
        # nn.Linear(emb_dim + 2*hid_dim, output_dim): weight [V, E+2H] stored transposed -> [E+2H, V]
        "w_fc": scale * jax.random.normal(ks[5], (emb_dim + 2 * hid_dim, output_dim), jnp.float32),
        "b_fc": scale * jax.random.normal(ks[6], (1, output_dim), jnp.float32),
    }


if __name__ == "__main__":
    output_dim, emb_dim, hid_dim = 64, 32, 32
    batch = 8

    key = jax.random.PRNGKey(0)
    kp_key, ki, kh, kc = jax.random.split(key, 4)

    params = init_params(kp_key, output_dim, emb_dim, hid_dim)
    kparams = prepare_params(params, tile_v=512, compute_dtype=jnp.bfloat16)

    input_ids = jax.random.randint(ki, (batch,), 0, output_dim, dtype=jnp.int32)
    hidden = 0.1 * jax.random.normal(kh, (1, batch, hid_dim), jnp.float32)
    context = 0.1 * jax.random.normal(kc, (1, batch, hid_dim), jnp.float32)

    prediction, new_hidden = decoder_forward(kparams, input_ids, hidden, context)
    jax.block_until_ready((prediction, new_hidden))

    assert prediction.shape == (batch, output_dim), prediction.shape
    assert new_hidden.shape == (1, batch, hid_dim), new_hidden.shape
    print("KERNEL_OK")
</pallas_src>

<mosaic_0001>
module attributes {stable_mosaic.version = 11 : i64} {
  func.func @decoder_kernel(%arg0: i32, %arg1: memref<8x32xbf16, #tpu.memory_space<vmem>>, %arg2: memref<8x32xbf16, #tpu.memory_space<vmem>>, %arg3: memref<8x32xbf16, #tpu.memory_space<vmem>>, %arg4: memref<3x32x32xbf16, #tpu.memory_space<vmem>>, %arg5: memref<3x32x32xbf16, #tpu.memory_space<vmem>>, %arg6: memref<3x32x32xbf16, #tpu.memory_space<vmem>>, %arg7: memref<4x1x32xf32, #tpu.memory_space<vmem>>, %arg8: memref<32x128xbf16, #tpu.memory_space<vmem>>, %arg9: memref<32x128xbf16, #tpu.memory_space<vmem>>, %arg10: memref<32x128xbf16, #tpu.memory_space<vmem>>, %arg11: memref<1x128xf32, #tpu.memory_space<vmem>>, %arg12: memref<8x128xf32, #tpu.memory_space<vmem>>, %arg13: memref<8x32xf32, #tpu.memory_space<vmem>>, %arg14: memref<8x32xbf16, #tpu.memory_space<vmem>>) attributes {dimension_semantics = [#tpu.dimension_semantics<arbitrary>], iteration_bounds = array<i64: 1>, scalar_prefetch = 0 : i64, scratch_operands = 1 : i64, tpu.core_type = #tpu.core_type<tc>, window_params = [{pipeline_mode = #tpu.pipeline_mode<synchronous>, transform_indices = @transform_0, window_bounds = array<i64: 8, 32>}, {pipeline_mode = #tpu.pipeline_mode<synchronous>, transform_indices = @transform_1, window_bounds = array<i64: 8, 32>}, {pipeline_mode = #tpu.pipeline_mode<synchronous>, transform_indices = @transform_2, window_bounds = array<i64: 8, 32>}, {pipeline_mode = #tpu.pipeline_mode<synchronous>, transform_indices = @transform_3, window_bounds = array<i64: 3, 32, 32>}, {pipeline_mode = #tpu.pipeline_mode<synchronous>, transform_indices = @transform_4, window_bounds = array<i64: 3, 32, 32>}, {pipeline_mode = #tpu.pipeline_mode<synchronous>, transform_indices = @transform_5, window_bounds = array<i64: 3, 32, 32>}, {pipeline_mode = #tpu.pipeline_mode<synchronous>, transform_indices = @transform_6, window_bounds = array<i64: 4, 1, 32>}, {transform_indices = @transform_7, window_bounds = array<i64: 32, 128>}, {transform_indices = @transform_8, window_bounds = array<i64: 32, 128>}, {transform_indices = @transform_9, window_bounds = array<i64: 32, 128>}, {transform_indices = @transform_10, window_bounds = array<i64: 1, 128>}, {transform_indices = @transform_11, window_bounds = array<i64: 8, 128>}, {pipeline_mode = #tpu.pipeline_mode<synchronous>, transform_indices = @transform_12, window_bounds = array<i64: 8, 32>}]} {
    %c0 = arith.constant 0 : index
    %c0_0 = arith.constant 0 : index
    %0 = vector.load %arg1[%c0, %c0_0] : memref<8x32xbf16, #tpu.memory_space<vmem>>, vector<8x32xbf16>
    %c0_1 = arith.constant 0 : index
    %c0_2 = arith.constant 0 : index
    %1 = vector.load %arg2[%c0_1, %c0_2] : memref<8x32xbf16, #tpu.memory_space<vmem>>, vector<8x32xbf16>
    %c0_i32 = arith.constant 0 : i32
    %2 = arith.cmpi eq, %arg0, %c0_i32 : i32
    %3 = arith.extui %2 : i1 to i32
    %c0_i32_3 = arith.constant 0 : i32
    %4 = arith.cmpi ne, %3, %c0_i32_3 : i32
    scf.if %4 {
      %c0_18 = arith.constant 0 : index
      %c0_19 = arith.constant 0 : index
      %18 = vector.load %arg3[%c0_18, %c0_19] : memref<8x32xbf16, #tpu.memory_space<vmem>>, vector<8x32xbf16>
      %c0_20 = arith.constant 0 : index
      %c0_21 = arith.constant 0 : index
      %c0_22 = arith.constant 0 : index
      %19 = vector.load %arg4[%c0_20, %c0_21, %c0_22] : memref<3x32x32xbf16, #tpu.memory_space<vmem>>, vector<1x32x32xbf16>
      %20 = vector.shape_cast %19 : vector<1x32x32xbf16> to vector<32x32xbf16>
      %cst_23 = arith.constant dense<0.000000e+00> : vector<8x32xf32>
      %21 = tpu.matmul %0, %20, %cst_23 {dimension_numbers = #tpu.dot_dimension_numbers<[1], [0], [0], [1], [0, 0, 1, 1], [], []>} : vector<8x32xbf16>, vector<32x32xbf16>, vector<8x32xf32> -> vector<8x32xf32>
      %c0_24 = arith.constant 0 : index
      %c0_25 = arith.constant 0 : index
      %c0_26 = arith.constant 0 : index
      %22 = vector.load %arg5[%c0_24, %c0_25, %c0_26] : memref<3x32x32xbf16, #tpu.memory_space<vmem>>, vector<1x32x32xbf16>
      %23 = vector.shape_cast %22 : vector<1x32x32xbf16> to vector<32x32xbf16>
      %cst_27 = arith.constant dense<0.000000e+00> : vector<8x32xf32>
      %24 = tpu.matmul %1, %23, %cst_27 {dimension_numbers = #tpu.dot_dimension_numbers<[1], [0], [0], [1], [0, 0, 1, 1], [], []>} : vector<8x32xbf16>, vector<32x32xbf16>, vector<8x32xf32> -> vector<8x32xf32>
      %25 = arith.addf %21, %24 : vector<8x32xf32>
      %c0_28 = arith.constant 0 : index
      %c0_29 = arith.constant 0 : index
      %c0_30 = arith.constant 0 : index
      %26 = vector.load %arg6[%c0_28, %c0_29, %c0_30] : memref<3x32x32xbf16, #tpu.memory_space<vmem>>, vector<1x32x32xbf16>
      %27 = vector.shape_cast %26 : vector<1x32x32xbf16> to vector<32x32xbf16>
      %cst_31 = arith.constant dense<0.000000e+00> : vector<8x32xf32>
      %28 = tpu.matmul %18, %27, %cst_31 {dimension_numbers = #tpu.dot_dimension_numbers<[1], [0], [0], [1], [0, 0, 1, 1], [], []>} : vector<8x32xbf16>, vector<32x32xbf16>, vector<8x32xf32> -> vector<8x32xf32>
      %29 = arith.addf %25, %28 : vector<8x32xf32>
      %c0_32 = arith.constant 0 : index
      %c0_33 = arith.constant 0 : index
      %c0_34 = arith.constant 0 : index
      %30 = vector.load %arg7[%c0_32, %c0_33, %c0_34] : memref<4x1x32xf32, #tpu.memory_space<vmem>>, vector<1x1x32xf32>
      %31 = vector.shape_cast %30 : vector<1x1x32xf32> to vector<1x32xf32>
      %32 = vector.broadcast %31 : vector<1x32xf32> to vector<8x32xf32>
      %33 = arith.addf %29, %32 : vector<8x32xf32>
      %34 = arith.negf %33 : vector<8x32xf32>
      %35 = math.exp %34 : vector<8x32xf32>
      %cst_35 = arith.constant 1.000000e+00 : f32
      %36 = vector.broadcast %cst_35 : f32 to vector<8x32xf32>
      %37 = arith.addf %36, %35 : vector<8x32xf32>
      %38 = arith.divf %36, %37 : vector<8x32xf32>
      %c1 = arith.constant 1 : index
      %c0_36 = arith.constant 0 : index
      %c0_37 = arith.constant 0 : index
      %39 = vector.load %arg4[%c1, %c0_36, %c0_37] : memref<3x32x32xbf16, #tpu.memory_space<vmem>>, vector<1x32x32xbf16>
      %40 = vector.shape_cast %39 : vector<1x32x32xbf16> to vector<32x32xbf16>
      %cst_38 = arith.constant dense<0.000000e+00> : vector<8x32xf32>
      %41 = tpu.matmul %0, %40, %cst_38 {dimension_numbers = #tpu.dot_dimension_numbers<[1], [0], [0], [1], [0, 0, 1, 1], [], []>} : vector<8x32xbf16>, vector<32x32xbf16>, vector<8x32xf32> -> vector<8x32xf32>
      %c1_39 = arith.constant 1 : index
      %c0_40 = arith.constant 0 : index
      %c0_41 = arith.constant 0 : index
      %42 = vector.load %arg5[%c1_39, %c0_40, %c0_41] : memref<3x32x32xbf16, #tpu.memory_space<vmem>>, vector<1x32x32xbf16>
      %43 = vector.shape_cast %42 : vector<1x32x32xbf16> to vector<32x32xbf16>
      %cst_42 = arith.constant dense<0.000000e+00> : vector<8x32xf32>
      %44 = tpu.matmul %1, %43, %cst_42 {dimension_numbers = #tpu.dot_dimension_numbers<[1], [0], [0], [1], [0, 0, 1, 1], [], []>} : vector<8x32xbf16>, vector<32x32xbf16>, vector<8x32xf32> -> vector<8x32xf32>
      %45 = arith.addf %41, %44 : vector<8x32xf32>
      %c1_43 = arith.constant 1 : index
      %c0_44 = arith.constant 0 : index
      %c0_45 = arith.constant 0 : index
      %46 = vector.load %arg6[%c1_43, %c0_44, %c0_45] : memref<3x32x32xbf16, #tpu.memory_space<vmem>>, vector<1x32x32xbf16>
      %47 = vector.shape_cast %46 : vector<1x32x32xbf16> to vector<32x32xbf16>
      %cst_46 = arith.constant dense<0.000000e+00> : vector<8x32xf32>
      %48 = tpu.matmul %18, %47, %cst_46 {dimension_numbers = #tpu.dot_dimension_numbers<[1], [0], [0], [1], [0, 0, 1, 1], [], []>} : vector<8x32xbf16>, vector<32x32xbf16>, vector<8x32xf32> -> vector<8x32xf32>
      %49 = arith.addf %45, %48 : vector<8x32xf32>
      %c1_47 = arith.constant 1 : index
      %c0_48 = arith.constant 0 : index
      %c0_49 = arith.constant 0 : index
      %50 = vector.load %arg7[%c1_47, %c0_48, %c0_49] : memref<4x1x32xf32, #tpu.memory_space<vmem>>, vector<1x1x32xf32>
      %51 = vector.shape_cast %50 : vector<1x1x32xf32> to vector<1x32xf32>
      %52 = vector.broadcast %51 : vector<1x32xf32> to vector<8x32xf32>
      %53 = arith.addf %49, %52 : vector<8x32xf32>
      %54 = arith.negf %53 : vector<8x32xf32>
      %55 = math.exp %54 : vector<8x32xf32>
      %cst_50 = arith.constant 1.000000e+00 : f32
      %56 = vector.broadcast %cst_50 : f32 to vector<8x32xf32>
      %57 = arith.addf %56, %55 : vector<8x32xf32>
      %58 = arith.divf %56, %57 : vector<8x32xf32>
      %c2 = arith.constant 2 : index
      %c0_51 = arith.constant 0 : index
      %c0_52 = arith.constant 0 : index
      %59 = vector.load %arg4[%c2, %c0_51, %c0_52] : memref<3x32x32xbf16, #tpu.memory_space<vmem>>, vector<1x32x32xbf16>
      %60 = vector.shape_cast %59 : vector<1x32x32xbf16> to vector<32x32xbf16>
      %cst_53 = arith.constant dense<0.000000e+00> : vector<8x32xf32>
      %61 = tpu.matmul %0, %60, %cst_53 {dimension_numbers = #tpu.dot_dimension_numbers<[1], [0], [0], [1], [0, 0, 1, 1], [], []>} : vector<8x32xbf16>, vector<32x32xbf16>, vector<8x32xf32> -> vector<8x32xf32>
      %c2_54 = arith.constant 2 : index
      %c0_55 = arith.constant 0 : index
      %c0_56 = arith.constant 0 : index
      %62 = vector.load %arg5[%c2_54, %c0_55, %c0_56] : memref<3x32x32xbf16, #tpu.memory_space<vmem>>, vector<1x32x32xbf16>
      %63 = vector.shape_cast %62 : vector<1x32x32xbf16> to vector<32x32xbf16>
      %cst_57 = arith.constant dense<0.000000e+00> : vector<8x32xf32>
      %64 = tpu.matmul %1, %63, %cst_57 {dimension_numbers = #tpu.dot_dimension_numbers<[1], [0], [0], [1], [0, 0, 1, 1], [], []>} : vector<8x32xbf16>, vector<32x32xbf16>, vector<8x32xf32> -> vector<8x32xf32>
      %65 = arith.addf %61, %64 : vector<8x32xf32>
      %c2_58 = arith.constant 2 : index
      %c0_59 = arith.constant 0 : index
      %c0_60 = arith.constant 0 : index
      %66 = vector.load %arg7[%c2_58, %c0_59, %c0_60] : memref<4x1x32xf32, #tpu.memory_space<vmem>>, vector<1x1x32xf32>
      %67 = vector.shape_cast %66 : vector<1x1x32xf32> to vector<1x32xf32>
      %68 = vector.broadcast %67 : vector<1x32xf32> to vector<8x32xf32>
      %69 = arith.addf %65, %68 : vector<8x32xf32>
      %c2_61 = arith.constant 2 : index
      %c0_62 = arith.constant 0 : index
      %c0_63 = arith.constant 0 : index
      %70 = vector.load %arg6[%c2_61, %c0_62, %c0_63] : memref<3x32x32xbf16, #tpu.memory_space<vmem>>, vector<1x32x32xbf16>
      %71 = vector.shape_cast %70 : vector<1x32x32xbf16> to vector<32x32xbf16>
      %cst_64 = arith.constant dense<0.000000e+00> : vector<8x32xf32>
      %72 = tpu.matmul %18, %71, %cst_64 {dimension_numbers = #tpu.dot_dimension_numbers<[1], [0], [0], [1], [0, 0, 1, 1], [], []>} : vector<8x32xbf16>, vector<32x32xbf16>, vector<8x32xf32> -> vector<8x32xf32>
      %c3 = arith.constant 3 : index
      %c0_65 = arith.constant 0 : index
      %c0_66 = arith.constant 0 : index
      %73 = vector.load %arg7[%c3, %c0_65, %c0_66] : memref<4x1x32xf32, #tpu.memory_space<vmem>>, vector<1x1x32xf32>
      %74 = vector.shape_cast %73 : vector<1x1x32xf32> to vector<1x32xf32>
      %75 = vector.broadcast %74 : vector<1x32xf32> to vector<8x32xf32>
      %76 = arith.addf %72, %75 : vector<8x32xf32>
      %77 = arith.mulf %38, %76 : vector<8x32xf32>
      %78 = arith.addf %69, %77 : vector<8x32xf32>
      %79 = math.tanh %78 : vector<8x32xf32>
      %cst_67 = arith.constant 1.000000e+00 : f32
      %80 = vector.broadcast %cst_67 : f32 to vector<8x32xf32>
      %81 = arith.subf %80, %58 : vector<8x32xf32>
      %82 = arith.mulf %81, %79 : vector<8x32xf32>
      %83 = arith.extf %18 : vector<8x32xbf16> to vector<8x32xf32>
      %84 = arith.mulf %58, %83 : vector<8x32xf32>
      %85 = arith.addf %82, %84 : vector<8x32xf32>
      %c0_68 = arith.constant 0 : index
      %c0_69 = arith.constant 0 : index
      %86 = vector.load %arg13[%c0_68, %c0_69] : memref<8x32xf32, #tpu.memory_space<vmem>>, vector<8x32xf32>
      tpu.vector_store %arg13[%c0_68, %c0_69], %85 {strides = array<i32>} : memref<8x32xf32, #tpu.memory_space<vmem>>, vector<8x32xf32>,
      %87 = arith.truncf %85 : vector<8x32xf32> to vector<8x32xbf16>
      %c0_70 = arith.constant 0 : index
      %c0_71 = arith.constant 0 : index
      %88 = vector.load %arg14[%c0_70, %c0_71] : memref<8x32xbf16, #tpu.memory_space<vmem>>, vector<8x32xbf16>
      tpu.vector_store %arg14[%c0_70, %c0_71], %87 {strides = array<i32>} : memref<8x32xbf16, #tpu.memory_space<vmem>>, vector<8x32xbf16>,
    } else {
    }
    %c0_4 = arith.constant 0 : index
    %c0_5 = arith.constant 0 : index
    %5 = vector.load %arg8[%c0_4, %c0_5] : memref<32x128xbf16, #tpu.memory_space<vmem>>, vector<32x128xbf16>
    %cst = arith.constant dense<0.000000e+00> : vector<8x128xf32>
    %6 = tpu.matmul %0, %5, %cst {dimension_numbers = #tpu.dot_dimension_numbers<[1], [0], [0], [1], [0, 0, 1, 1], [], []>} : vector<8x32xbf16>, vector<32x128xbf16>, vector<8x128xf32> -> vector<8x128xf32>
    %c0_6 = arith.constant 0 : index
    %c0_7 = arith.constant 0 : index
    %7 = vector.load %arg14[%c0_6, %c0_7] : memref<8x32xbf16, #tpu.memory_space<vmem>>, vector<8x32xbf16>
    %c0_8 = arith.constant 0 : index
    %c0_9 = arith.constant 0 : index
    %8 = vector.load %arg9[%c0_8, %c0_9] : memref<32x128xbf16, #tpu.memory_space<vmem>>, vector<32x128xbf16>
    %cst_10 = arith.constant dense<0.000000e+00> : vector<8x128xf32>
    %9 = tpu.matmul %7, %8, %cst_10 {dimension_numbers = #tpu.dot_dimension_numbers<[1], [0], [0], [1], [0, 0, 1, 1], [], []>} : vector<8x32xbf16>, vector<32x128xbf16>, vector<8x128xf32> -> vector<8x128xf32>
    %10 = arith.addf %6, %9 : vector<8x128xf32>
    %c0_11 = arith.constant 0 : index
    %c0_12 = arith.constant 0 : index
    %11 = vector.load %arg10[%c0_11, %c0_12] : memref<32x128xbf16, #tpu.memory_space<vmem>>, vector<32x128xbf16>
    %cst_13 = arith.constant dense<0.000000e+00> : vector<8x128xf32>
    %12 = tpu.matmul %1, %11, %cst_13 {dimension_numbers = #tpu.dot_dimension_numbers<[1], [0], [0], [1], [0, 0, 1, 1], [], []>} : vector<8x32xbf16>, vector<32x128xbf16>, vector<8x128xf32> -> vector<8x128xf32>
    %13 = arith.addf %10, %12 : vector<8x128xf32>
    %c0_14 = arith.constant 0 : index
    %c0_15 = arith.constant 0 : index
    %14 = vector.load %arg11[%c0_14, %c0_15] : memref<1x128xf32, #tpu.memory_space<vmem>>, vector<1x128xf32>
    %15 = vector.broadcast %14 : vector<1x128xf32> to vector<8x128xf32>
    %16 = arith.addf %13, %15 : vector<8x128xf32>
    %c0_16 = arith.constant 0 : index
    %c0_17 = arith.constant 0 : index
    %17 = vector.load %arg12[%c0_16, %c0_17] : memref<8x128xf32, #tpu.memory_space<vmem>>, vector<8x128xf32>
    tpu.vector_store %arg12[%c0_16, %c0_17], %16 {strides = array<i32>} : memref<8x128xf32, #tpu.memory_space<vmem>>, vector<8x128xf32>,
    return
  }
  func.func @transform_0(%arg0: i32) -> (i32, i32) {
    %c0_i32 = arith.constant 0 : i32
    %c0_i32_0 = arith.constant 0 : i32
    %c0_i32_1 = arith.constant 0 : i32
    return %c0_i32, %c0_i32_0 : i32, i32
  }
  func.func @transform_1(%arg0: i32) -> (i32, i32) {
    %c0_i32 = arith.constant 0 : i32
    %c0_i32_0 = arith.constant 0 : i32
    %c0_i32_1 = arith.constant 0 : i32
    return %c0_i32, %c0_i32_0 : i32, i32
  }
  func.func @transform_2(%arg0: i32) -> (i32, i32) {
    %c0_i32 = arith.constant 0 : i32
    %c0_i32_0 = arith.constant 0 : i32
    %c0_i32_1 = arith.constant 0 : i32
    return %c0_i32, %c0_i32_0 : i32, i32
  }
  func.func @transform_3(%arg0: i32) -> (i32, i32, i32) {
    %c0_i32 = arith.constant 0 : i32
    %c0_i32_0 = arith.constant 0 : i32
    %c0_i32_1 = arith.constant 0 : i32
    %c0_i32_2 = arith.constant 0 : i32
    return %c0_i32, %c0_i32_0, %c0_i32_1 : i32, i32, i32
  }
  func.func @transform_4(%arg0: i32) -> (i32, i32, i32) {
    %c0_i32 = arith.constant 0 : i32
    %c0_i32_0 = arith.constant 0 : i32
    %c0_i32_1 = arith.constant 0 : i32
    %c0_i32_2 = arith.constant 0 : i32
    return %c0_i32, %c0_i32_0, %c0_i32_1 : i32, i32, i32
  }
  func.func @transform_5(%arg0: i32) -> (i32, i32, i32) {
    %c0_i32 = arith.constant 0 : i32
    %c0_i32_0 = arith.constant 0 : i32
    %c0_i32_1 = arith.constant 0 : i32
    %c0_i32_2 = arith.constant 0 : i32
    return %c0_i32, %c0_i32_0, %c0_i32_1 : i32, i32, i32
  }
  func.func @transform_6(%arg0: i32) -> (i32, i32, i32) {
    %c0_i32 = arith.constant 0 : i32
    %c0_i32_0 = arith.constant 0 : i32
    %c0_i32_1 = arith.constant 0 : i32
    %c0_i32_2 = arith.constant 0 : i32
    return %c0_i32, %c0_i32_0, %c0_i32_1 : i32, i32, i32
  }
  func.func @transform_7(%arg0: i32) -> (i32, i32) {
    %c0_i32 = arith.constant 0 : i32
    %c0_i32_0 = arith.constant 0 : i32
    return %c0_i32, %arg0 : i32, i32
  }
  func.func @transform_8(%arg0: i32) -> (i32, i32) {
    %c0_i32 = arith.constant 0 : i32
    %c0_i32_0 = arith.constant 0 : i32
    return %c0_i32, %arg0 : i32, i32
  }
  func.func @transform_9(%arg0: i32) -> (i32, i32) {
    %c0_i32 = arith.constant 0 : i32
    %c0_i32_0 = arith.constant 0 : i32
    return %c0_i32, %arg0 : i32, i32
  }
  func.func @transform_10(%arg0: i32) -> (i32, i32) {
    %c0_i32 = arith.constant 0 : i32
    %c0_i32_0 = arith.constant 0 : i32
    return %c0_i32, %arg0 : i32, i32
  }
  func.func @transform_11(%arg0: i32) -> (i32, i32) {
    %c0_i32 = arith.constant 0 : i32
    %c0_i32_0 = arith.constant 0 : i32
    return %c0_i32, %arg0 : i32, i32
  }
  func.func @transform_12(%arg0: i32) -> (i32, i32) {
    %c0_i32 = arith.constant 0 : i32
    %c0_i32_0 = arith.constant 0 : i32
    %c0_i32_1 = arith.constant 0 : i32
    return %c0_i32, %c0_i32_0 : i32, i32
  }
}

</mosaic_0001>

<bundles_post_ra>
// kernel: tpu_custom_call.1
= control target key start
LH: loop header
LB: loop body
LE: loop exit
PB: predicated region body
PF: predicated region fallthrough
CT: control target
= control target key end

     0   :  { %18 = vsyncpa [#allocation4], 0  ;;  %s1646_s0 = inlined_call_operand.hbm [shape: bf16[8,32], index: 0, kind: input, shape index: {}]   ;;  %s1647_s1 = inlined_call_operand.hbm [shape: bf16[8,32], index: 1, kind: input, shape index: {}]   ;;  %s1648_s2 = inlined_call_operand.hbm [shape: bf16[8,32], index: 2, kind: input, shape index: {}]   ;;  %s1649_s3 = inlined_call_operand.hbm [shape: bf16[3,32,32], index: 3, kind: input, shape index: {}]   ;;  %s1650_s4 = inlined_call_operand.hbm [shape: bf16[3,32,32], index: 4, kind: input, shape index: {}]   ;;  %s1651_s5 = inlined_call_operand.hbm [shape: bf16[3,32,32], index: 5, kind: input, shape index: {}]   ;;  %s1652_s6 = inlined_call_operand.hbm [shape: f32[4,1,32], index: 6, kind: input, shape index: {}]   ;;  %s1653_s7 = inlined_call_operand.hbm [shape: bf16[32,128], index: 7, kind: input, shape index: {}]   ;;  %s1654_s8 = inlined_call_operand.hbm [shape: bf16[32,128], index: 8, kind: input, shape index: {}]   ;;  %s1655_s9 = inlined_call_operand.vmem [shape: bf16[32,128], index: 9, kind: input, shape index: {}]   ;;  %s1656_s10 = inlined_call_operand.vmem [shape: f32[1,128], index: 10, kind: input, shape index: {}]   ;;  %s1657_s11 = inlined_call_operand.hbm [shape: f32[8,128], index: 11, kind: output, shape index: {0}]   ;;  %s1658_s12 = inlined_call_operand.hbm [shape: f32[8,32], index: 12, kind: output, shape index: {1}]  }
   0x1   :  { %19 = vsyncpa [#allocation7], 0 }
   0x2   :  { %20 = vsyncpa [#allocation10], 0 }
   0x3   :  { %21 = vsyncpa [#allocation13], 0 }
   0x4   :  { %22 = vsyncpa [#allocation16], 0 }
   0x5   :  { %23 = vsyncpa [#allocation5], 0 }
   0x6   :  { %24 = vsyncpa [#allocation20], 0  ;;  %s1428_s21 = smov [#allocation6]   ;;  %s1429_s23 = smov [#allocation9]  }
   0x7   :  { %s41_s22 = sshll.u32 %s1428_s21, 4  ;;  %s60_s24 = sshll.u32 %s1429_s23, 4  ;;  %s42_s22 = int_to_ptr.vmem [resolvable:$true] %s41_s22  ;;  %s61_s24 = int_to_ptr.vmem [resolvable:$true] %s60_s24 }
   0x8   :  { %s1202_s25 = scalar_lea.vmem %s42_s22, 64  ;;  %p1207_p1 = scmp.lt.s32.totalorder %s42_s22, %s42_s22 }
   0x9   :  { %p1203_p0 = scmp.ne.s32.totalorder %s42_s22, %s1202_s25  ;;  %p1208_p2 = scmp.lt.s32.totalorder %s1202_s25, %s1202_s25 }
   0xb   :  { %p1209_p3 = por %p1208_p2, %p1207_p1 }
   0xd   :  { %p1210_p4 = pnand %p1209_p3, %p1203_p0 }
   0xf   :  { %1213 = shalt.err (!%p1210_p4)
}
  0x10   :  { %44 = dma.hbm_to_vmem [thread:$0]  %s1647_s1, 64, %s42_s22, [#allocation7]  }
  0x11   :  { %s1222_s28 = scalar_lea.vmem %s61_s24, 768  ;;  %p1227_p6 = scmp.lt.s32.totalorder %s61_s24, %s61_s24 }
  0x12   :  { %p1223_p5 = scmp.ne.s32.totalorder %s61_s24, %s1222_s28  ;;  %p1228_p7 = scmp.lt.s32.totalorder %s1222_s28, %s1222_s28 }
  0x14   :  { %p1229_p8 = por %p1228_p7, %p1227_p6 }
  0x16   :  { %p1230_p9 = pnand %p1229_p8, %p1223_p5 }
  0x18   :  { %1233 = shalt.err (!%p1230_p9)
}
  0x19   :  { %s1430_s29 = smov 64   ;;  %s1431_s30 = smov 4  }
  0x1a   :  { %66 = dma.hbm_to_vmem [thread:$0]  %s1649_s3, 768, %s61_s24, [#allocation10], %s1430_s29, %s1430_s29, %s1431_s30  }
  0x1b   :  { %s1432_s15 = smov [#allocation12]   ;;  %s1433_s17 = smov [#allocation15]  }
  0x1c   :  { %s84_s16 = sshll.u32 %s1432_s15, 4  ;;  %s108_s1 = sshll.u32 %s1433_s17, 4  ;;  %s85_s16 = int_to_ptr.vmem [resolvable:$true] %s84_s16  ;;  %s109_s1 = int_to_ptr.vmem [resolvable:$true] %s108_s1 }
  0x1d   :  { %s1242_s18 = scalar_lea.vmem %s85_s16, 768  ;;  %p1247_p11 = scmp.lt.s32.totalorder %s85_s16, %s85_s16 }
  0x1e   :  { %p1243_p10 = scmp.ne.s32.totalorder %s85_s16, %s1242_s18  ;;  %p1248_p12 = scmp.lt.s32.totalorder %s1242_s18, %s1242_s18 }
  0x20   :  { %p1249_p13 = por %p1248_p12, %p1247_p11 }
  0x22   :  { %p1250_p0 = pnand %p1249_p13, %p1243_p10 }
  0x24   :  { %1253 = shalt.err (!%p1250_p0)
}
  0x25   :  { %90 = dma.hbm_to_vmem [thread:$0]  %s1651_s5, 768, %s85_s16, [#allocation13], %s1430_s29, %s1430_s29, %s1431_s30  }
  0x26   :  { %s1262_s3 = scalar_lea.vmem %s109_s1, 256  ;;  %p1267_p2 = scmp.lt.s32.totalorder %s109_s1, %s109_s1 }
  0x27   :  { %p1263_p1 = scmp.ne.s32.totalorder %s109_s1, %s1262_s3  ;;  %p1268_p3 = scmp.lt.s32.totalorder %s1262_s3, %s1262_s3 }
  0x29   :  { %p1269_p4 = por %p1268_p3, %p1267_p2 }
  0x2b   :  { %p1270_p5 = pnand %p1269_p4, %p1263_p1 }
  0x2d   :  { %1273 = shalt.err (!%p1270_p5)
}
  0x2e   :  { %114 = dma.hbm_to_vmem [thread:$0]  %s1653_s7, 256, %s109_s1, [#allocation16], %s1430_s29, %s1430_s29, %s1431_s30  }
  0x2f   :  { %s1434_s23 = smov [#allocation3]   ;;  %s1435_s25 = smov [#allocation8]  }
  0x30   :  { %s31_s24 = sshll.u32 %s1434_s23, 4  ;;  %s51_s26 = sshll.u32 %s1435_s25, 4  ;;  %s32_s24 = int_to_ptr.vmem [resolvable:$true] %s31_s24  ;;  %s52_s26 = int_to_ptr.vmem [resolvable:$true] %s51_s26 }
  0x31   :  { %s1282_s5 = scalar_lea.vmem %s32_s24, 64  ;;  %p1287_p7 = scmp.lt.s32.totalorder %s32_s24, %s32_s24 }
  0x32   :  { %p1283_p6 = scmp.ne.s32.totalorder %s32_s24, %s1282_s5  ;;  %p1288_p8 = scmp.lt.s32.totalorder %s1282_s5, %s1282_s5 }
  0x34   :  { %p1289_p9 = por %p1288_p8, %p1287_p7 }
  0x36   :  { %p1290_p10 = pnand %p1289_p9, %p1283_p6 }
  0x38   :  { %1293 = shalt.err (!%p1290_p10)
}
  0x39   :  { %34 = dma.hbm_to_vmem [thread:$0]  %s1646_s0, 64, %s32_s24, [#allocation4]  }
  0x3a   :  { %s1302_s13 = scalar_lea.vmem %s52_s26, 64  ;;  %p1307_p12 = scmp.lt.s32.totalorder %s52_s26, %s52_s26 }
  0x3b   :  { %p1303_p11 = scmp.ne.s32.totalorder %s52_s26, %s1302_s13  ;;  %p1308_p13 = scmp.lt.s32.totalorder %s1302_s13, %s1302_s13 }
  0x3d   :  { %p1309_p0 = por %p1308_p13, %p1307_p12 }
  0x3f   :  { %p1310_p1 = pnand %p1309_p0, %p1303_p11 }
  0x41   :  { %1313 = shalt.err (!%p1310_p1)
}
  0x42   :  { %54 = dma.hbm_to_vmem [thread:$0]  %s1648_s2, 64, %s52_s26, [#allocation7]  }
  0x43   :  { %s1436_s15 = smov [#allocation11]   ;;  %s1437_s17 = smov [#allocation14]  }
  0x44   :  { %s72_s16 = sshll.u32 %s1436_s15, 4  ;;  %s96_s1 = sshll.u32 %s1437_s17, 4  ;;  %s73_s16 = int_to_ptr.vmem [resolvable:$true] %s72_s16  ;;  %s97_s1 = int_to_ptr.vmem [resolvable:$true] %s96_s1 }
  0x45   :  { %s1322_s18 = scalar_lea.vmem %s73_s16, 768  ;;  %p1327_p3 = scmp.lt.s32.totalorder %s73_s16, %s73_s16 }
  0x46   :  { %p1323_p2 = scmp.ne.s32.totalorder %s73_s16, %s1322_s18  ;;  %p1328_p4 = scmp.lt.s32.totalorder %s1322_s18, %s1322_s18 }
  0x48   :  { %p1329_p5 = por %p1328_p4, %p1327_p3 }
  0x4a   :  { %p1330_p6 = pnand %p1329_p5, %p1323_p2 }
  0x4c   :  { %1333 = shalt.err (!%p1330_p6)
}
  0x4d   :  { %78 = dma.hbm_to_vmem [thread:$0]  %s1650_s4, 768, %s73_s16, [#allocation10], %s1430_s29, %s1430_s29, %s1431_s30  }
  0x4e   :  { %s1342_s2 = scalar_lea.vmem %s97_s1, 64  ;;  %p1347_p8 = scmp.lt.s32.totalorder %s97_s1, %s97_s1 }
  0x4f   :  { %p1343_p7 = scmp.ne.s32.totalorder %s97_s1, %s1342_s2  ;;  %p1348_p9 = scmp.lt.s32.totalorder %s1342_s2, %s1342_s2 }
  0x51   :  { %p1349_p10 = por %p1348_p9, %p1347_p8 }
  0x53   :  { %p1350_p11 = pnand %p1349_p10, %p1343_p7 }
  0x55   :  { %1353 = shalt.err (!%p1350_p11)
}
  0x56   :  { %s1438_s20 = smov 16   ;;  %s1439_s3 = smov 1  }
  0x57   :  { %102 = dma.hbm_to_vmem [thread:$0]  %s1652_s6, 64, %s97_s1, [#allocation13], %s1438_s20, %s1438_s20, %s1439_s3  }
  0x58   :  { %s1440_s23 = smov [#allocation17]  }
  0x59   :  { %s120_s24 = sshll.u32 %s1440_s23, 4  ;;  %s121_s24 = int_to_ptr.vmem [resolvable:$true] %s120_s24 }
  0x5a   :  { %s1362_s25 = scalar_lea.vmem %s121_s24, 256  ;;  %p1367_p13 = scmp.lt.s32.totalorder %s121_s24, %s121_s24 }
  0x5b   :  { %p1363_p12 = scmp.ne.s32.totalorder %s121_s24, %s1362_s25  ;;  %p1368_p0 = scmp.lt.s32.totalorder %s1362_s25, %s1362_s25 }
  0x5d   :  { %p1369_p1 = por %p1368_p0, %p1367_p13 }
  0x5f   :  { %p1370_p2 = pnand %p1369_p1, %p1363_p12 }
  0x61   :  { %1373 = shalt.err (!%p1370_p2)
}
  0x62   :  { %126 = dma.hbm_to_vmem [thread:$0]  %s1654_s8, 256, %s121_s24, [#allocation16], %s1430_s29, %s1430_s29, %s1431_s30  }
  0x63   :  { %1414 = dma.done.wait [#allocation4], 64  }
  0x64   :  { %1415 = vsyncadd [#allocation4], 4294967232 }
  0x65   :  { %1416 = dma.done.wait [#allocation7], 128  }
  0x66   :  { %1417 = vsyncadd [#allocation7], 4294967168 }
  0x67   :  { %1418 = dma.done.wait [#allocation10], 1536  }
  0x68   :  { %1419 = vsyncadd [#allocation10], 4294965760 }
  0x69   :  { %1420 = dma.done.wait [#allocation13], 832  }
  0x6a   :  { %1421 = vsyncadd [#allocation13], 4294966464 }
  0x6b   :  { %1422 = dma.done.wait [#allocation16], 512  }
  0x6c   :  { %1423 = vsyncadd [#allocation16], 4294966784  ;;  %v1441_v0 = vmov 0.0   ;;  %vm1442_vm0 = vmmov 0   ;;  %v1160_v1 = vld [vmem:[#allocation11 + $0x8] sm:$0xff]   ;;  %v1161_v2 = vld [vmem:[#allocation9 + $0x8] sm:$0xff]  }
  0x6d   :  { %1047 = vmatprep.subr.bf16.mxu0 %v1441_v0  ;;  %1055 = vmatprep.subr.bf16.mxu1 %v1441_v0  ;;  %v1162_v3 = vld [vmem:[#allocation11] sm:$0xff]   ;;  %v1163_v4 = vld [vmem:[#allocation9] sm:$0xff]   ;;  %v1560_v5 = vld [vmem:[#allocation6] sm:$0xf]  ;;  %vm186_vm1 = vcmask 261120   ;;  %vm744_vm2 = vcmask 257024  }
  0x6e   :  { %1051 = vmatprep.mubr.msk.bf16.mxu0 %vm1442_vm0, %v1441_v0  ;;  %1059 = vmatprep.mubr.msk.bf16.mxu1 %vm1442_vm0, %v1441_v0  ;;  %v1164_v6 = vld [vmem:[#allocation12 + $0x8] sm:$0xff]   ;;  %v1563_v7 = vld [vmem:[#allocation3] sm:$0xf]  ;;  %v1166_v9 = vld [vmem:[#allocation12] sm:$0xff]   ;;  %s1443_s5 = smov [#allocation19]  }
  0x6f   :  { %1048 = vmatpush3.bf16.msra.mxu0 %v1160_v1  ;;  %1056 = vmatpush3.bf16.msra.mxu1 %v1161_v2  ;;  %v1165_v8 = vld [vmem:[#allocation11 + $0x18] sm:$0xff]   ;;  %v1167_v10 = vld [vmem:[#allocation11 + $0x10] sm:$0xff]   ;;  %v1574_v11 = vld [vmem:[#allocation8] sm:$0xf]  ;;  %s951_s27 = sshll.u32 %s1443_s5, 4  ;;  %s952_s27 = int_to_ptr.vmem [resolvable:$true] %s951_s27 }
  0x70   :  { %1049 = vmatprep.subr.bf16.mxu0 %v1441_v0  ;;  %1057 = vmatprep.subr.bf16.mxu1 %v1441_v0  ;;  %v1168_v12 = vld [vmem:[#allocation9 + $0x18] sm:$0xff]   ;;  %v1170_v14 = vld [vmem:[#allocation9 + $0x10] sm:$0xff]   ;;  %v1174_v17 = vld [vmem:[#allocation9 + $0x28] sm:$0xff]   ;;  %s1374_s28 = scalar_lea.vmem %s952_s27, 128  ;;  %p1379_p4 = scmp.lt.s32.totalorder %s952_s27, %s952_s27 }
  0x71   :  { %v1169_v13 = vld [vmem:[#allocation12 + $0x18] sm:$0xff]   ;;  %v1171_v15 = vld [vmem:[#allocation12 + $0x10] sm:$0xff]   ;;  %v1176_v19 = vld [vmem:[#allocation9 + $0x20] sm:$0xff]   ;;  %p1375_p3 = scmp.ne.s32.totalorder %s952_s27, %s1374_s28  ;;  %p1380_p5 = scmp.lt.s32.totalorder %s1374_s28, %s1374_s28 }
  0x72   :  { %v1172_v16 = vld [vmem:[#allocation11 + $0x28] sm:$0xff]   ;;  %v1173_v18 = vld [vmem:[#allocation11 + $0x20] sm:$0xff]   ;;  %v1175_v20 = vld [vmem:[#allocation12 + $0x28] sm:$0xff]  }
  0x73   :  { %1050 = vmatpush3.bf16.msra.mxu0 %v1162_v3  ;;  %1058 = vmatpush3.bf16.msra.mxu1 %v1163_v4  ;;  %v1177_v21 = vld [vmem:[#allocation12 + $0x20] sm:$0xff]   ;;  %v1178_v22 = vld [vmem:[#allocation17 + $0x8] sm:$0xff]   ;;  %v1181_v25 = vld [vmem:[#allocation15] sm:$0xff]   ;;  %p1381_p6 = por %p1380_p5, %p1379_p4 }
  0x74   :  { %1063 = vmatprep.subr.bf16.mxu0 %v1441_v0  ;;  %1071 = vmatprep.subr.bf16.mxu1 %v1441_v0  ;;  %v1179_v23 = vld [vmem:[#allocation15 + $0x8] sm:$0xff]   ;;  %v1180_v24 = vld [vmem:[#allocation17] sm:$0xff]   ;;  %v977_v36 = vld [vmem:[#allocation14] ss:$0 sm:$0xff] }
  0x75   :  { %v988_v51 = vld [vmem:[#allocation14 + $0x1] ss:$0 sm:$0xff]  ;;  %p1382_p7 = pnand %p1381_p6, %p1375_p3 }
  0x76   :  { %1052 = vmatmul.mubr.msk.bf16.vlgmr.msra.gmra.mxu0 %vm186_vm1, %v1560_v5  ;;  %1060 = vmatmul.mubr.msk.bf16.vlgmr.msra.gmra.mxu1 %vm186_vm1, %v1563_v7 }
  0x77   :  { %1064 = vmatpush3.bf16.msra.mxu0 %v1164_v6  ;;  %1072 = vmatpush3.bf16.msra.mxu1 %v1165_v8 }
  0x78   :  { %1065 = vmatprep.subr.bf16.mxu0 %v1441_v0  ;;  %1067 = vmatprep.mubr.msk.bf16.mxu0 %vm1442_vm0, %v1441_v0 }
  0x79   :  { %1073 = vmatprep.subr.bf16.mxu1 %v1441_v0  ;;  %1075 = vmatprep.mubr.msk.bf16.mxu1 %vm1442_vm0, %v1441_v0 }
  0x7b   :  { %1066 = vmatpush3.bf16.msra.mxu0 %v1166_v9  ;;  %1074 = vmatpush3.bf16.msra.mxu1 %v1167_v10 }
  0x7c   :  { %1079 = vmatprep.subr.bf16.mxu0 %v1441_v0  ;;  %1087 = vmatprep.subr.bf16.mxu1 %v1441_v0 }
  0x7e   :  { %1068 = vmatmul.mubr.msk.bf16.vlgmr.msra.gmra.mxu0 %vm186_vm1, %v1574_v11  ;;  %1076 = vmatmul.mubr.msk.bf16.vlgmr.msra.gmra.mxu1 %vm186_vm1, %v1560_v5 }
  0x7f   :  { %1080 = vmatpush3.bf16.msra.mxu0 %v1168_v12  ;;  %1088 = vmatpush3.bf16.msra.mxu1 %v1169_v13  ;;  %v997_v13 = vld [vmem:[#allocation14 + $0x3] ss:$0 sm:$0xff] }
  0x80   :  { %1081 = vmatprep.subr.bf16.mxu0 %v1441_v0  ;;  %1089 = vmatprep.subr.bf16.mxu1 %v1441_v0 }
  0x81   :  { %1083 = vmatprep.mubr.msk.bf16.mxu0 %vm1442_vm0, %v1441_v0  ;;  %1091 = vmatprep.mubr.msk.bf16.mxu1 %vm1442_vm0, %v1441_v0 }
  0x83   :  { %1082 = vmatpush3.bf16.msra.mxu0 %v1170_v14  ;;  %1090 = vmatpush3.bf16.msra.mxu1 %v1171_v15 }
  0x84   :  { %1095 = vmatprep.subr.bf16.mxu0 %v1441_v0  ;;  %1103 = vmatprep.subr.bf16.mxu1 %v1441_v0 }
  0x86   :  { %1084 = vmatmul.mubr.msk.bf16.vlgmr.msra.gmra.mxu0 %vm186_vm1, %v1563_v7  ;;  %1092 = vmatmul.mubr.msk.bf16.vlgmr.msra.gmra.mxu1 %vm186_vm1, %v1574_v11 }
  0x87   :  { %1096 = vmatpush3.bf16.msra.mxu0 %v1172_v16  ;;  %1099 = vmatprep.mubr.msk.bf16.mxu0 %vm1442_vm0, %v1441_v0 }
  0x88   :  { %1097 = vmatprep.subr.bf16.mxu0 %v1441_v0  ;;  %1104 = vmatpush3.bf16.msra.mxu1 %v1174_v17 }
  0x89   :  { %1107 = vmatprep.mubr.msk.bf16.mxu1 %vm1442_vm0, %v1441_v0  ;;  %1105 = vmatprep.subr.bf16.mxu1 %v1441_v0 }
  0x8b   :  { %1098 = vmatpush3.bf16.msra.mxu0 %v1173_v18  ;;  %v996_v18 = vld [vmem:[#allocation14 + $0x2] ss:$0 sm:$0xff] }
  0x8c   :  { %1111 = vmatprep.subr.bf16.mxu0 %v1441_v0  ;;  %1106 = vmatpush3.bf16.msra.mxu1 %v1176_v19 }
  0x8d   :  { %1119 = vmatprep.subr.bf16.mxu1 %v1441_v0 }
  0x8e   :  { %1100 = vmatmul.mubr.msk.bf16.vlgmr.msra.gmra.mxu0 %vm186_vm1, %v1560_v5 }
  0x8f   :  { %1112 = vmatpush3.bf16.msra.mxu0 %v1175_v20  ;;  %1115 = vmatprep.mubr.msk.bf16.mxu0 %vm1442_vm0, %v1441_v0 }
  0x90   :  { %1113 = vmatprep.subr.bf16.mxu0 %v1441_v0  ;;  %1108 = vmatmul.mubr.msk.bf16.vlgmr.msra.gmra.mxu1 %vm186_vm1, %v1563_v7 }
  0x91   :  { %1123 = vmatprep.mubr.msk.bf16.mxu1 %vm1442_vm0, %v1441_v0  ;;  %1120 = vmatpush3.bf16.msra.mxu1 %v1178_v22 }
  0x92   :  { %1121 = vmatprep.subr.bf16.mxu1 %v1441_v0 }
  0x93   :  { %1114 = vmatpush3.bf16.msra.mxu0 %v1177_v21 }
  0x94   :  { %1127 = vmatprep.subr.bf16.mxu0 %v1441_v0 }
  0x95   :  { %1122 = vmatpush3.bf16.msra.mxu1 %v1180_v24  ;;  %v739_v24 = vunpack.c.l.bf16 %v1574_v11 }
  0x96   :  { %1116 = vmatmul.mubr.msk.bf16.vlgmr.msra.gmra.mxu0 %vm186_vm1, %v1574_v11  ;;  %1135 = vmatprep.subr.bf16.mxu1 %v1441_v0  ;;  %v1183_v11 = vld [vmem:[%s1655_s9] sm:$0xff]  }
  0x97   :  { %1131 = vmatprep.mubr.msk.bf16.mxu0 %vm1442_vm0, %v1441_v0  ;;  %1128 = vmatpush3.bf16.msra.mxu0 %v1179_v23 }
  0x98   :  { %1129 = vmatprep.subr.bf16.mxu0 %v1441_v0 }
  0x9b   :  { %1130 = vmatpush3.bf16.msra.mxu0 %v1181_v25 }
  0x9e   :  { %1132 = vmatmul.mubr.msk.bf16.vlgmr.msra.gmra.mxu0 %vm186_vm1, %v1563_v7 }
 0x136   :  { %v224_v26 = vpop.f32.mrf.mxu0  ;;  %v279_v27 = vpop.f32.mrf.mxu1 }
 0x137   :  { %v280_v33 = vadd.f32 %v279_v27, %v224_v26 }
 0x138   :  { %v1053_v28 = vpop.f32.mrf.mxu0  ;;  %v1061_v29 = vpop.f32.mrf.mxu1 }
 0x13a   :  { %v227_v30 = vpop.f32.mrf.mxu0  ;;  %v282_v31 = vpop.f32.mrf.mxu1 }
 0x13b   :  { %v1182_v31 = vld [vmem:[%s1655_s9 + $0x8] sm:$0xff]  }
 0x13c   :  { %v1054_v32 = vpop.f32.mrf.mxu0  ;;  %v1062_v34 = vpop.f32.mrf.mxu1 }
 0x13e   :  { %v338_v35 = vpop.f32.mrf.mxu0  ;;  %v415_v38 = vpop.f32.mrf.mxu1 }
 0x13f   :  { %v344_v37 = vadd.f32 %v338_v35, %v280_v33 }
 0x140   :  { %v1069_v39 = vpop.f32.mrf.mxu0  ;;  %v1077_v41 = vpop.f32.mrf.mxu1 }
 0x141   :  { %v352_v40 = vadd.f32 %v977_v36, %v344_v37 }
 0x142   :  { %v341_v42 = vpop.f32.mrf.mxu0  ;;  %v418_v44 = vpop.f32.mrf.mxu1 }
 0x143   :  { %v978_v43 = vmul.f32 -1.442695, %v352_v40 }
 0x144   :  { %v1070_v45 = vpop.f32.mrf.mxu0  ;;  %v1078_v46 = vpop.f32.mrf.mxu1 }
 0x145   :  { %1184 = vpow2.f32 %v978_v43 }
 0x146   :  { %v467_v47 = vpop.f32.mrf.mxu0  ;;  %v524_v49 = vpop.f32.mrf.mxu1 }
 0x147   :  { %v468_v48 = vadd.f32 %v467_v47, %v415_v38 }
 0x148   :  { %v1085_v50 = vpop.f32.mrf.mxu0  ;;  %v1093_v53 = vpop.f32.mrf.mxu1 }
 0x149   :  { %v530_v52 = vadd.f32 %v524_v49, %v468_v48 }
 0x14a   :  { %v470_v54 = vpop.f32.mrf.mxu0  ;;  %v527_v56 = vpop.f32.mrf.mxu1 }
 0x14b   :  { %v539_v55 = vadd.f32 %v988_v51, %v530_v52 }
 0x14c   :  { %v1086_v57 = vpop.f32.mrf.mxu0  ;;  %v1094_v59 = vpop.f32.mrf.mxu1 }
 0x14d   :  { %v989_v58 = vmul.f32 -1.442695, %v539_v55 }
 0x14e   :  { %v602_v60 = vpop.f32.mrf.mxu0 }
 0x14f   :  { %1186 = vpow2.f32 %v989_v58 }
 0x150   :  { %v1101_v61 = vpop.f32.mrf.mxu0  ;;  %v654_v62 = vpop.f32.mrf.mxu1 }
 0x151   :  { %v655_v16 = vadd.f32 %v654_v62, %v602_v60 }
 0x152   :  { %v1185_v63 = vpop.eup %1184  ;;  %v605_v1 = vpop.f32.mrf.mxu0 }
 0x153   :  { %v1109_v2 = vpop.f32.mrf.mxu1  ;;  %v356_v3 = vadd.f32 1.0, %v1185_v63  ;;  %v668_v20 = vadd.f32 %v996_v18, %v655_v16 }
 0x154   :  { %v1102_v4 = vpop.f32.mrf.mxu0 }
 0x155   :  { %v657_v6 = vpop.f32.mrf.mxu1  ;;  %1188 = vrcp.f32 %v356_v3 }
 0x156   :  { %v728_v7 = vpop.f32.mrf.mxu0 }
 0x157   :  { %v1110_v8 = vpop.f32.mrf.mxu1  ;;  %v729_v17 = vadd.f32 %v997_v13, %v728_v7 }
 0x158   :  { %v1117_v9 = vpop.f32.mrf.mxu0 }
 0x15a   :  { %v731_v10 = vpop.f32.mrf.mxu0 }
 0x15c   :  { %v1187_v12 = vpop.eup %1186  ;;  %v1118_v14 = vpop.f32.mrf.mxu0 }
 0x15d   :  { %v543_v15 = vadd.f32 1.0, %v1187_v12 }
 0x15e   :  { %v860_v33 = vpop.f32.mrf.mxu0 }
 0x15f   :  { %1190 = vrcp.f32 %v543_v15 }
 0x160   :  { %v1133_v34 = vpop.f32.mrf.mxu0 }
 0x162   :  { %v1189_v19 = vpop.eup %1188  ;;  %v863_v35 = vpop.f32.mrf.mxu0 }
 0x163   :  { %v734_v21 = vmul.f32 %v1189_v19, %v729_v17 }
 0x164   :  { %v1134_v36 = vpop.f32.mrf.mxu0 }
 0x165   :  { %v735_v22 = vadd.f32 %v734_v21, %v668_v20 }
 0x167   :  { %1192 = vtanh.f32 %v735_v22 }
 0x16c   :  { %v1191_v23 = vpop.eup %1190 }
 0x16d   :  { %v737_v25 = vsub.f32 1.0, %v1191_v23  ;;  %v740_v27 = vmul.f32 %v1191_v23, %v739_v24 }
 0x174   :  { %v1193_v26 = vpop.eup %1192 }
 0x175   :  { %v738_v28 = vmul.f32 %v1193_v26, %v737_v25 }
 0x177   :  { %v741_v29 = vadd.f32 %v740_v27, %v738_v28 }
 0x179   :  { %v743_v30 = vpack.c.bf16 %v741_v29, %v741_v29  ;;  %742 = vst.msk [vmem:[#allocation19] sm:$0xff] %vm186_vm1, %v741_v29 }
 0x17b   :  { %745 = vst.msk [vmem:[#allocation2] sm:$0xf] %vm744_vm2, %v743_v30 }
 0x182   :  { %v750_v32 = vld [vmem:[#allocation2] sm:$0xf] }
 0x183   :  { %1124 = vmatmul.mubr.msk.bf16.vlgmr.msra.gmra.mxu1 %vm186_vm1, %v750_v32 }
 0x184   :  { %1136 = vmatpush3.bf16.msra.mxu1 %v1182_v31  ;;  %1139 = vmatprep.mubr.msk.bf16.mxu1 %vm1442_vm0, %v1441_v0 }
 0x185   :  { %1137 = vmatprep.subr.bf16.mxu1 %v1441_v0 }
 0x188   :  { %1138 = vmatpush3.bf16.msra.mxu1 %v1183_v11 }
 0x18b   :  { %1140 = vmatmul.mubr.msk.bf16.vlgmr.msra.gmra.mxu1 %vm186_vm1, %v1560_v5 }
 0x18c   :  { %1385 = shalt.err (!%p1382_p7)
}
 0x18d   :  { %954 = dma.vmem_to_hbm [thread:$0]  %s952_s27, 128, %s1658_s12, [#allocation20]   ;;  %v1010_v41 = vld [vmem:[%s1656_s10] ss:$0 sm:$0xff] }
 0x18e   :  { %s1444_s15 = smov [#allocation18]  }
 0x18f   :  { %s941_s16 = sshll.u32 %s1444_s15, 4  ;;  %s942_s16 = int_to_ptr.vmem [resolvable:$true] %s941_s16 }
 0x190   :  { %s1394_s12 = scalar_lea.vmem %s942_s16, 128  ;;  %p1399_p9 = scmp.lt.s32.totalorder %s942_s16, %s942_s16 }
 0x191   :  { %p1395_p8 = scmp.ne.s32.totalorder %s942_s16, %s1394_s12  ;;  %p1400_p10 = scmp.lt.s32.totalorder %s1394_s12, %s1394_s12 }
 0x193   :  { %p1401_p11 = por %p1400_p10, %p1399_p9 }
 0x195   :  { %p1402_p12 = pnand %p1401_p11, %p1395_p8 }
 0x243   :  { %v805_v0 = vpop.f32.mrf.mxu1 }
 0x244   :  { %v861_v39 = vadd.f32 %v860_v33, %v805_v0 }
 0x245   :  { %v1125_v5 = vpop.f32.mrf.mxu1 }
 0x247   :  { %v808_v37 = vpop.f32.mrf.mxu1 }
 0x249   :  { %v1126_v38 = vpop.f32.mrf.mxu1 }
 0x24b   :  { %v919_v40 = vpop.f32.mrf.mxu1 }
 0x24c   :  { %v925_v42 = vadd.f32 %v919_v40, %v861_v39 }
 0x24d   :  { %v1141_v43 = vpop.f32.mrf.mxu1 }
 0x24e   :  { %v933_v44 = vadd.f32 %v1010_v41, %v925_v42 }
 0x24f   :  { %v922_v45 = vpop.f32.mrf.mxu1 }
 0x250   :  { %934 = vst [vmem:[#allocation18] sm:$0xff] %v933_v44 }
 0x251   :  { %v1142_v46 = vpop.f32.mrf.mxu1 }
 0x252   :  { %1405 = shalt.err (!%p1402_p12)
}
 0x253   :  { %944 = dma.vmem_to_hbm [thread:$0]  %s942_s16, 128, %s1657_s11, [#allocation5]  }
 0x254   :  { %1424 = dma.done.wait [#allocation5], 128  }
 0x255   :  { %1425 = vsyncadd [#allocation5], 4294967168 }
 0x256   :  { %1426 = dma.done.wait [#allocation20], 128  }
 0x257   :  { %1427 = vsyncadd [#allocation20], 4294967168 }
 0x258   :  { %961 = vsyncpa [#allocation4], 1 }
 0x259   :  { %962 = vsyncpa [#allocation7], 1 }
 0x25a   :  { %963 = vsyncpa [#allocation10], 1 }
 0x25b   :  { %964 = vsyncpa [#allocation13], 1 }
 0x25c   :  { %965 = vsyncpa [#allocation16], 1 }
 0x25d   :  { %966 = vsyncpa [#allocation5], 1 }
 0x25e   :  { %967 = vsyncpa [#allocation20], 1 }

</bundles_post_ra>
